<compile_context>
chip_gen: v7x
topology: tpu7x:2x2x1
jax: 0.10.0
libtpu: 0.0.40
codegen_flags: <defaults>
</compile_context>

<pallas_src>
import math

import jax
import jax.numpy as jnp
from jax.experimental import pallas as pl
from jax.experimental.pallas import tpu as pltpu


_LANES = 1024           # lane-dense slab width (multiple of 128)
_MAX_TILE_ROWS = 256    # 256 x 1024 x 4B = 1 MiB per stream per block


def make_haar_filters(dtype=jnp.float32):
    """Deterministic parameters mirroring get_wav(): rows are [LL, LH, HL, HH],
    each row the 2x2 filter flattened as [w00, w01, w10, w11]."""
    s = 1.0 / math.sqrt(2.0)
    L = jnp.array([s, s], dtype=dtype)
    H = jnp.array([-s, s], dtype=dtype)
    return jnp.stack(
        [jnp.outer(L, L).reshape(4), jnp.outer(L, H).reshape(4),
         jnp.outer(H, L).reshape(4), jnp.outer(H, H).reshape(4)], axis=0)


def _wavepool_kernel(a_ref, b_ref, c_ref, d_ref,
                     ll_ref, lh_ref, hl_ref, hh_ref):
    # a,b,c,d are the four corners of each 2x2 stride-2 patch:
    #   a = x[..., 0::2, 0::2], b = x[..., 0::2, 1::2],
    #   c = x[..., 1::2, 0::2], d = x[..., 1::2, 1::2]
    a = a_ref[...]
    b = b_ref[...]
    c = c_ref[...]
    d = d_ref[...]
    # Haar butterfly (filters fixed: L=[1,1]/sqrt2, H=[-1,1]/sqrt2 => 0.5 net):
    s1 = a + b          # top-row horizontal sum
    s2 = c + d          # bottom-row horizontal sum
    d1 = b - a          # top-row horizontal diff
    d2 = d - c          # bottom-row horizontal diff
    ll_ref[...] = 0.5 * (s1 + s2)
    lh_ref[...] = 0.5 * (d1 + d2)
    hl_ref[...] = 0.5 * (s2 - s1)
    hh_ref[...] = 0.5 * (d2 - d1)


def wave_pool(x, *, lanes=_LANES, max_tile_rows=_MAX_TILE_ROWS):
    """WavePool forward.  x: NCHW float.  Returns (LL, LH, HL, HH) NCHW/2."""
    N, C, H, W = x.shape
    assert H % 2 == 0 and W % 2 == 0, "H and W must be even (stride-2 conv)"
    Hout, Wout = H // 2, W // 2
    T = N * C * Hout * Wout

    # Layout glue: de-interleave the 2x2 patch corners, flatten to 1-D.
    a = x[:, :, 0::2, 0::2].reshape(-1)
    b = x[:, :, 0::2, 1::2].reshape(-1)
    c = x[:, :, 1::2, 0::2].reshape(-1)
    d = x[:, :, 1::2, 1::2].reshape(-1)

    # Lane-dense slab geometry: (rows_pad, lanes) with rows_pad % tm == 0.
    rows = pl.cdiv(T, lanes)
    # Largest tile <= max_tile_rows that still gives >= 2 grid steps when the
    # problem is big enough; always a multiple of 8 sublanes.
    tm = min(max_tile_rows, max(8, 8 * pl.cdiv(pl.cdiv(rows, 2), 8)))
    rows_pad = pl.cdiv(rows, tm) * tm
    Tp = rows_pad * lanes

    def slab(v):
        return jnp.pad(v, (0, Tp - T)).reshape(rows_pad, lanes)

    a, b, c, d = slab(a), slab(b), slab(c), slab(d)

    grid = (rows_pad // tm,)
    vspec = pl.BlockSpec((tm, lanes), lambda i: (i, 0))
    out_sds = jax.ShapeDtypeStruct((rows_pad, lanes), x.dtype)

    ll, lh, hl, hh = pl.pallas_call(
        _wavepool_kernel,
        out_shape=(out_sds, out_sds, out_sds, out_sds),
        grid=grid,
        in_specs=[vspec, vspec, vspec, vspec],
        out_specs=(vspec, vspec, vspec, vspec),
        compiler_params=pltpu.CompilerParams(
            dimension_semantics=("parallel",),
            vmem_limit_bytes=32 * 1024 * 1024,
        ),
    )(a, b, c, d)

    def unslab(o):
        return o.reshape(-1)[:T].reshape(N, C, Hout, Wout)

    return unslab(ll), unslab(lh), unslab(hl), unslab(hh)


def wave_pool_ref(x, filters):
    """Pure-JAX reference: the depthwise 2x2 stride-2 Haar convs."""
    a = x[:, :, 0::2, 0::2]
    b = x[:, :, 0::2, 1::2]
    c = x[:, :, 1::2, 0::2]
    d = x[:, :, 1::2, 1::2]
    outs = []
    for fi in range(4):
        w = filters[fi]
        outs.append(w[0] * a + w[1] * b + w[2] * c + w[3] * d)
    return tuple(outs)


if __name__ == "__main__":
    key = jax.random.PRNGKey(0)
    filters = make_haar_filters(jnp.float32)  # deterministic "weights"

    # Main test shape (consistent with the Conv2d usage).
    N, C, H, W = 2, 4, 16, 16
    x = jax.random.normal(key, (N, C, H, W), dtype=jnp.float32)
    outs = jax.block_until_ready(wave_pool(x))
    refs = wave_pool_ref(x, filters)
    for o, r in zip(outs, refs):
        assert o.shape == (N, C, H // 2, W // 2)
        assert jnp.allclose(o, r, atol=1e-5), "mismatch vs reference"

    # Second shape exercising the padded-tail / non-pow2 path (Wout=7).
    x2 = jax.random.normal(jax.random.PRNGKey(1), (1, 3, 14, 14),
                           dtype=jnp.float32)
    outs2 = jax.block_until_ready(wave_pool(x2))
    refs2 = wave_pool_ref(x2, filters)
    for o, r in zip(outs2, refs2):
        assert o.shape == (1, 3, 7, 7)
        assert jnp.allclose(o, r, atol=1e-5), "mismatch vs reference (padded)"

    print("KERNEL_OK")
</pallas_src>

<mosaic_0001>
module attributes {stable_mosaic.version = 11 : i64} {
  func.func @_wavepool_kernel(%arg0: i32, %arg1: memref<8x1024xf32, #tpu.memory_space<vmem>>, %arg2: memref<8x1024xf32, #tpu.memory_space<vmem>>, %arg3: memref<8x1024xf32, #tpu.memory_space<vmem>>, %arg4: memref<8x1024xf32, #tpu.memory_space<vmem>>, %arg5: memref<8x1024xf32, #tpu.memory_space<vmem>>, %arg6: memref<8x1024xf32, #tpu.memory_space<vmem>>, %arg7: memref<8x1024xf32, #tpu.memory_space<vmem>>, %arg8: memref<8x1024xf32, #tpu.memory_space<vmem>>) attributes {dimension_semantics = [#tpu.dimension_semantics<parallel>], iteration_bounds = array<i64: 1>, scalar_prefetch = 0 : i64, scratch_operands = 0 : i64, tpu.core_type = #tpu.core_type<tc>, window_params = [{transform_indices = @transform_0, window_bounds = array<i64: 8, 1024>}, {transform_indices = @transform_1, window_bounds = array<i64: 8, 1024>}, {transform_indices = @transform_2, window_bounds = array<i64: 8, 1024>}, {transform_indices = @transform_3, window_bounds = array<i64: 8, 1024>}, {transform_indices = @transform_4, window_bounds = array<i64: 8, 1024>}, {transform_indices = @transform_5, window_bounds = array<i64: 8, 1024>}, {transform_indices = @transform_6, window_bounds = array<i64: 8, 1024>}, {transform_indices = @transform_7, window_bounds = array<i64: 8, 1024>}]} {
    %c0 = arith.constant 0 : index
    %c0_0 = arith.constant 0 : index
    %0 = vector.load %arg1[%c0, %c0_0] : memref<8x1024xf32, #tpu.memory_space<vmem>>, vector<8x1024xf32>
    %c0_1 = arith.constant 0 : index
    %c0_2 = arith.constant 0 : index
    %1 = vector.load %arg2[%c0_1, %c0_2] : memref<8x1024xf32, #tpu.memory_space<vmem>>, vector<8x1024xf32>
    %c0_3 = arith.constant 0 : index
    %c0_4 = arith.constant 0 : index
    %2 = vector.load %arg3[%c0_3, %c0_4] : memref<8x1024xf32, #tpu.memory_space<vmem>>, vector<8x1024xf32>
    %c0_5 = arith.constant 0 : index
    %c0_6 = arith.constant 0 : index
    %3 = vector.load %arg4[%c0_5, %c0_6] : memref<8x1024xf32, #tpu.memory_space<vmem>>, vector<8x1024xf32>
    %4 = arith.addf %0, %1 : vector<8x1024xf32>
    %5 = arith.addf %2, %3 : vector<8x1024xf32>
    %6 = arith.subf %1, %0 : vector<8x1024xf32>
    %7 = arith.subf %3, %2 : vector<8x1024xf32>
    %8 = arith.addf %4, %5 : vector<8x1024xf32>
    %cst = arith.constant 5.000000e-01 : f32
    %9 = vector.broadcast %cst : f32 to vector<8x1024xf32>
    %10 = arith.mulf %9, %8 : vector<8x1024xf32>
    %c0_7 = arith.constant 0 : index
    %c0_8 = arith.constant 0 : index
    %11 = vector.load %arg5[%c0_7, %c0_8] : memref<8x1024xf32, #tpu.memory_space<vmem>>, vector<8x1024xf32>
    tpu.vector_store %arg5[%c0_7, %c0_8], %10 {strides = array<i32>} : memref<8x1024xf32, #tpu.memory_space<vmem>>, vector<8x1024xf32>,
    %12 = arith.addf %6, %7 : vector<8x1024xf32>
    %cst_9 = arith.constant 5.000000e-01 : f32
    %13 = vector.broadcast %cst_9 : f32 to vector<8x1024xf32>
    %14 = arith.mulf %13, %12 : vector<8x1024xf32>
    %c0_10 = arith.constant 0 : index
    %c0_11 = arith.constant 0 : index
    %15 = vector.load %arg6[%c0_10, %c0_11] : memref<8x1024xf32, #tpu.memory_space<vmem>>, vector<8x1024xf32>
    tpu.vector_store %arg6[%c0_10, %c0_11], %14 {strides = array<i32>} : memref<8x1024xf32, #tpu.memory_space<vmem>>, vector<8x1024xf32>,
    %16 = arith.subf %5, %4 : vector<8x1024xf32>
    %cst_12 = arith.constant 5.000000e-01 : f32
    %17 = vector.broadcast %cst_12 : f32 to vector<8x1024xf32>
    %18 = arith.mulf %17, %16 : vector<8x1024xf32>
    %c0_13 = arith.constant 0 : index
    %c0_14 = arith.constant 0 : index
    %19 = vector.load %arg7[%c0_13, %c0_14] : memref<8x1024xf32, #tpu.memory_space<vmem>>, vector<8x1024xf32>
    tpu.vector_store %arg7[%c0_13, %c0_14], %18 {strides = array<i32>} : memref<8x1024xf32, #tpu.memory_space<vmem>>, vector<8x1024xf32>,
    %20 = arith.subf %7, %6 : vector<8x1024xf32>
    %cst_15 = arith.constant 5.000000e-01 : f32
    %21 = vector.broadcast %cst_15 : f32 to vector<8x1024xf32>
    %22 = arith.mulf %21, %20 : vector<8x1024xf32>
    %c0_16 = arith.constant 0 : index
    %c0_17 = arith.constant 0 : index
    %23 = vector.load %arg8[%c0_16, %c0_17] : memref<8x1024xf32, #tpu.memory_space<vmem>>, vector<8x1024xf32>
    tpu.vector_store %arg8[%c0_16, %c0_17], %22 {strides = array<i32>} : memref<8x1024xf32, #tpu.memory_space<vmem>>, vector<8x1024xf32>,
    return
  }
  func.func @transform_0(%arg0: i32) -> (i32, i32) {
    %c0_i32 = arith.constant 0 : i32
    %c0_i32_0 = arith.constant 0 : i32
    return %arg0, %c0_i32 : i32, i32
  }
  func.func @transform_1(%arg0: i32) -> (i32, i32) {
    %c0_i32 = arith.constant 0 : i32
    %c0_i32_0 = arith.constant 0 : i32
    return %arg0, %c0_i32 : i32, i32
  }
  func.func @transform_2(%arg0: i32) -> (i32, i32) {
    %c0_i32 = arith.constant 0 : i32
    %c0_i32_0 = arith.constant 0 : i32
    return %arg0, %c0_i32 : i32, i32
  }
  func.func @transform_3(%arg0: i32) -> (i32, i32) {
    %c0_i32 = arith.constant 0 : i32
    %c0_i32_0 = arith.constant 0 : i32
    return %arg0, %c0_i32 : i32, i32
  }
  func.func @transform_4(%arg0: i32) -> (i32, i32) {
    %c0_i32 = arith.constant 0 : i32
    %c0_i32_0 = arith.constant 0 : i32
    return %arg0, %c0_i32 : i32, i32
  }
  func.func @transform_5(%arg0: i32) -> (i32, i32) {
    %c0_i32 = arith.constant 0 : i32
    %c0_i32_0 = arith.constant 0 : i32
    return %arg0, %c0_i32 : i32, i32
  }
  func.func @transform_6(%arg0: i32) -> (i32, i32) {
    %c0_i32 = arith.constant 0 : i32
    %c0_i32_0 = arith.constant 0 : i32
    return %arg0, %c0_i32 : i32, i32
  }
  func.func @transform_7(%arg0: i32) -> (i32, i32) {
    %c0_i32 = arith.constant 0 : i32
    %c0_i32_0 = arith.constant 0 : i32
    return %arg0, %c0_i32 : i32, i32
  }
}

</mosaic_0001>

<bundles_post_ra>
// kernel: tpu_custom_call.1
= control target key start
LH: loop header
LB: loop body
LE: loop exit
PB: predicated region body
PF: predicated region fallthrough
CT: control target
= control target key end

     0   :  { %13 = vsyncpa [#allocation3], 0  ;;  %s749_s0 = inlined_call_operand.hbm [shape: f32[8,1024], index: 0, kind: input, shape index: {}]   ;;  %s750_s1 = inlined_call_operand.hbm [shape: f32[8,1024], index: 1, kind: input, shape index: {}]   ;;  %s751_s2 = inlined_call_operand.hbm [shape: f32[8,1024], index: 2, kind: input, shape index: {}]   ;;  %s752_s3 = inlined_call_operand.hbm [shape: f32[8,1024], index: 3, kind: input, shape index: {}]   ;;  %s753_s4 = inlined_call_operand.hbm [shape: f32[8,1024], index: 4, kind: output, shape index: {0}]   ;;  %s754_s5 = inlined_call_operand.hbm [shape: f32[8,1024], index: 5, kind: output, shape index: {1}]   ;;  %s755_s6 = inlined_call_operand.hbm [shape: f32[8,1024], index: 6, kind: output, shape index: {2}]   ;;  %s756_s7 = inlined_call_operand.hbm [shape: f32[8,1024], index: 7, kind: output, shape index: {3}]  }
   0x1   :  { %14 = vsyncpa [#allocation6], 0 }
   0x2   :  { %15 = vsyncpa [#allocation9], 0 }
   0x3   :  { %16 = vsyncpa [#allocation4], 0 }
   0x4   :  { %17 = vsyncpa [#allocation12], 0 }
   0x5   :  { %18 = vsyncpa [#allocation15], 0  ;;  %s485_s24 = smov [#allocation5]   ;;  %s486_s26 = smov [#allocation2]  }
   0x6   :  { %s35_s25 = sshll.u32 %s485_s24, 4  ;;  %s25_s27 = sshll.u32 %s486_s26, 4  ;;  %s36_s25 = int_to_ptr.vmem [resolvable:$true] %s35_s25  ;;  %s26_s27 = int_to_ptr.vmem [resolvable:$true] %s25_s27 }
   0x7   :  { %s297_s30 = scalar_lea.hbm %s750_s1, 1024 }
   0x8   :  { %p298_p0 = scmp.ne.s32.totalorder %s750_s1, %s297_s30  ;;  %p301_p1 = scmp.lt.u32.totalorder %s297_s30, %s750_s1 }
   0xa   :  { %p303_p2 = pnand %p301_p1, %p298_p0 }
   0xc   :  { %306 = shalt.err (!%p303_p2)
}
   0xd   :  { %s307_s12 = scalar_lea.vmem %s36_s25, 1024  ;;  %p312_p4 = scmp.lt.s32.totalorder %s36_s25, %s36_s25 }
   0xe   :  { %p308_p3 = scmp.ne.s32.totalorder %s36_s25, %s307_s12  ;;  %p313_p5 = scmp.lt.s32.totalorder %s307_s12, %s307_s12 }
  0x10   :  { %p314_p6 = por %p313_p5, %p312_p4 }
  0x12   :  { %p315_p7 = pnand %p314_p6, %p308_p3 }
  0x14   :  { %318 = shalt.err (!%p315_p7)
}
  0x15   :  { %38 = dma.hbm_to_vmem [thread:$0]  %s750_s1, 1024, %s36_s25, [#allocation6]  }
  0x16   :  { %s319_s17 = scalar_lea.hbm %s749_s0, 1024 }
  0x17   :  { %p320_p8 = scmp.ne.s32.totalorder %s749_s0, %s319_s17  ;;  %p323_p9 = scmp.lt.u32.totalorder %s319_s17, %s749_s0 }
  0x19   :  { %p325_p10 = pnand %p323_p9, %p320_p8 }
  0x1b   :  { %328 = shalt.err (!%p325_p10)
}
  0x1c   :  { %s329_s22 = scalar_lea.vmem %s26_s27, 1024  ;;  %p334_p12 = scmp.lt.s32.totalorder %s26_s27, %s26_s27 }
  0x1d   :  { %p330_p11 = scmp.ne.s32.totalorder %s26_s27, %s329_s22  ;;  %p335_p13 = scmp.lt.s32.totalorder %s329_s22, %s329_s22 }
  0x1f   :  { %p336_p0 = por %p335_p13, %p334_p12 }
  0x21   :  { %p337_p1 = pnand %p336_p0, %p330_p11 }
  0x23   :  { %340 = shalt.err (!%p337_p1)
}
  0x24   :  { %28 = dma.hbm_to_vmem [thread:$0]  %s749_s0, 1024, %s26_s27, [#allocation3]  }
  0x25   :  { %s487_s24 = smov [#allocation7]   ;;  %s488_s26 = smov [#allocation8]  }
  0x26   :  { %s45_s25 = sshll.u32 %s487_s24, 4  ;;  %s55_s28 = sshll.u32 %s488_s26, 4  ;;  %s46_s25 = int_to_ptr.vmem [resolvable:$true] %s45_s25  ;;  %s56_s28 = int_to_ptr.vmem [resolvable:$true] %s55_s28 }
  0x27   :  { %s341_s8 = scalar_lea.hbm %s751_s2, 1024 }
  0x28   :  { %p342_p2 = scmp.ne.s32.totalorder %s751_s2, %s341_s8  ;;  %p345_p3 = scmp.lt.u32.totalorder %s341_s8, %s751_s2 }
  0x2a   :  { %p347_p4 = pnand %p345_p3, %p342_p2 }
  0x2c   :  { %350 = shalt.err (!%p347_p4)
}
  0x2d   :  { %s351_s0 = scalar_lea.vmem %s46_s25, 1024  ;;  %p356_p6 = scmp.lt.s32.totalorder %s46_s25, %s46_s25 }
  0x2e   :  { %p352_p5 = scmp.ne.s32.totalorder %s46_s25, %s351_s0  ;;  %p357_p7 = scmp.lt.s32.totalorder %s351_s0, %s351_s0 }
  0x30   :  { %p358_p8 = por %p357_p7, %p356_p6 }
  0x32   :  { %p359_p9 = pnand %p358_p8, %p352_p5 }
  0x34   :  { %362 = shalt.err (!%p359_p9)
}
  0x35   :  { %48 = dma.hbm_to_vmem [thread:$0]  %s751_s2, 1024, %s46_s25, [#allocation6]  }
  0x36   :  { %s363_s16 = scalar_lea.hbm %s752_s3, 1024 }
  0x37   :  { %p364_p10 = scmp.ne.s32.totalorder %s752_s3, %s363_s16  ;;  %p367_p11 = scmp.lt.u32.totalorder %s363_s16, %s752_s3 }
  0x39   :  { %p369_p12 = pnand %p367_p11, %p364_p10 }
  0x3b   :  { %372 = shalt.err (!%p369_p12)
}
  0x3c   :  { %s373_s21 = scalar_lea.vmem %s56_s28, 1024  ;;  %p378_p0 = scmp.lt.s32.totalorder %s56_s28, %s56_s28 }
  0x3d   :  { %p374_p13 = scmp.ne.s32.totalorder %s56_s28, %s373_s21  ;;  %p379_p1 = scmp.lt.s32.totalorder %s373_s21, %s373_s21 }
  0x3f   :  { %p380_p2 = por %p379_p1, %p378_p0 }
  0x41   :  { %p381_p3 = pnand %p380_p2, %p374_p13 }
  0x43   :  { %384 = shalt.err (!%p381_p3)
}
  0x44   :  { %58 = dma.hbm_to_vmem [thread:$0]  %s752_s3, 1024, %s56_s28, [#allocation9]  }
  0x45   :  { %473 = dma.done.wait [#allocation3], 1024  }
  0x46   :  { %474 = vsyncadd [#allocation3], 4294966272 }
  0x47   :  { %475 = dma.done.wait [#allocation6], 2048  }
  0x48   :  { %476 = vsyncadd [#allocation6], 4294965248 }
  0x49   :  { %477 = dma.done.wait [#allocation9], 1024  }
  0x4a   :  { %478 = vsyncadd [#allocation9], 4294966272  ;;  %v71_v0 = vld [vmem:[#allocation2] sm:$0xff]  ;;  %v72_v5 = vld [vmem:[#allocation2 + $0x8] sm:$0xff]  ;;  %s489_s3 = smov [#allocation11]   ;;  %s490_s23 = smov [#allocation10]  }
  0x4b   :  { %v79_v1 = vld [vmem:[#allocation5] sm:$0xff]  ;;  %v80_v6 = vld [vmem:[#allocation5 + $0x8] sm:$0xff]  ;;  %v73_v12 = vld [vmem:[#allocation2 + $0x10] sm:$0xff]  ;;  %s247_s1 = sshll.u32 %s489_s3, 4  ;;  %s662_s24 = sshll.u32 %s490_s23, 4  ;;  %s652_s1 = int_to_ptr.vmem [resolvable:$true] %s247_s1  ;;  %s683_s24 = int_to_ptr.vmem [resolvable:$true] %s662_s24 }
  0x4c   :  { %v87_v2 = vld [vmem:[#allocation7] sm:$0xff]  ;;  %v581_v4 = vsub.f32 %v79_v1, %v71_v0  ;;  %v583_v7 = vadd.f32 %v79_v1, %v71_v0  ;;  %v88_v9 = vld [vmem:[#allocation7 + $0x8] sm:$0xff]  ;;  %v587_v11 = vsub.f32 %v80_v6, %v72_v5  ;;  %v591_v14 = vadd.f32 %v80_v6, %v72_v5  ;;  %v81_v16 = vld [vmem:[#allocation5 + $0x10] sm:$0xff]  ;;  %s385_s25 = scalar_lea.vmem %s652_s1, 1024  ;;  %p390_p5 = scmp.lt.s32.totalorder %s652_s1, %s652_s1 }
  0x4d   :  { %v95_v3 = vld [vmem:[#allocation8] sm:$0xff]  ;;  %v96_v10 = vld [vmem:[#allocation8 + $0x8] sm:$0xff]  ;;  %v89_v17 = vld [vmem:[#allocation7 + $0x10] sm:$0xff]  ;;  %v599_v21 = vsub.f32 %v81_v16, %v73_v12  ;;  %v611_v33 = vadd.f32 %v81_v16, %v73_v12  ;;  %p386_p4 = scmp.ne.s32.totalorder %s652_s1, %s385_s25  ;;  %p391_p6 = scmp.lt.s32.totalorder %s385_s25, %s385_s25 }
  0x4e   :  { %v585_v8 = vsub.f32 %v95_v3, %v87_v2  ;;  %v589_v13 = vadd.f32 %v95_v3, %v87_v2  ;;  %v593_v15 = vsub.f32 %v96_v10, %v88_v9  ;;  %v97_v18 = vld [vmem:[#allocation8 + $0x10] sm:$0xff]  ;;  %v595_v19 = vadd.f32 %v96_v10, %v88_v9  ;;  %v74_v23 = vld [vmem:[#allocation2 + $0x18] sm:$0xff]  ;;  %v75_v30 = vld [vmem:[#allocation2 + $0x20] sm:$0xff] }
  0x4f   :  { %v601_v22 = vsub.f32 %v97_v18, %v89_v17  ;;  %v82_v24 = vld [vmem:[#allocation5 + $0x18] sm:$0xff]  ;;  %v83_v31 = vld [vmem:[#allocation5 + $0x20] sm:$0xff]  ;;  %v76_v40 = vld [vmem:[#allocation2 + $0x28] sm:$0xff]  ;;  %v631_v60 = vadd.f32 %v97_v18, %v89_v17  ;;  %p392_p7 = por %p391_p6, %p390_p5 }
  0x50   :  { %v159_v20 = vadd.f32 %v585_v8, %v581_v4  ;;  %v90_v25 = vld [vmem:[#allocation7 + $0x18] sm:$0xff]  ;;  %v135_v26 = vadd.f32 %v589_v13, %v583_v7  ;;  %v160_v27 = vadd.f32 %v593_v15, %v587_v11  ;;  %v607_v29 = vsub.f32 %v82_v24, %v74_v23  ;;  %v91_v37 = vld [vmem:[#allocation7 + $0x20] sm:$0xff]  ;;  %v84_v43 = vld [vmem:[#allocation5 + $0x28] sm:$0xff] }
  0x51   :  { %v98_v28 = vld [vmem:[#allocation8 + $0x18] sm:$0xff]  ;;  %v136_v32 = vadd.f32 %v595_v19, %v591_v14  ;;  %v161_v35 = vadd.f32 %v601_v22, %v599_v21  ;;  %v99_v38 = vld [vmem:[#allocation8 + $0x20] sm:$0xff]  ;;  %v617_v39 = vsub.f32 %v83_v31, %v75_v30  ;;  %v92_v44 = vld [vmem:[#allocation7 + $0x28] sm:$0xff]  ;;  %v623_v50 = vsub.f32 %v84_v43, %v76_v40  ;;  %p393_p8 = pnand %p392_p7, %p386_p4 }
  0x52   :  { %v167_v34 = vmul.f32 0.5, %v159_v20  ;;  %v615_v36 = vsub.f32 %v98_v28, %v90_v25  ;;  %v168_v41 = vmul.f32 0.5, %v160_v27  ;;  %v619_v42 = vsub.f32 %v99_v38, %v91_v37  ;;  %v100_v45 = vld [vmem:[#allocation8 + $0x28] sm:$0xff]  ;;  %v77_v52 = vld [vmem:[#allocation2 + $0x30] sm:$0xff]  ;;  %v78_v58 = vld [vmem:[#allocation2 + $0x38] sm:$0xff] }
  0x53   :  { %v143_v46 = vmul.f32 0.5, %v135_v26  ;;  %v144_v47 = vmul.f32 0.5, %v136_v32  ;;  %v169_v48 = vmul.f32 0.5, %v161_v35  ;;  %v625_v51 = vsub.f32 %v100_v45, %v92_v44  ;;  %v85_v53 = vld [vmem:[#allocation5 + $0x30] sm:$0xff]  ;;  %v86_v59 = vld [vmem:[#allocation5 + $0x38] sm:$0xff] }
  0x54   :  { %175 = vst [vmem:[#allocation11] sm:$0xff] %v167_v34  ;;  %v162_v49 = vadd.f32 %v615_v36, %v607_v29  ;;  %v93_v54 = vld [vmem:[#allocation7 + $0x30] sm:$0xff]  ;;  %176 = vst [vmem:[#allocation11 + $0x8] sm:$0xff] %v168_v41  ;;  %v163_v55 = vadd.f32 %v619_v42, %v617_v39  ;;  %v629_v57 = vsub.f32 %v85_v53, %v77_v52  ;;  %v94_v1 = vld [vmem:[#allocation7 + $0x38] sm:$0xff] }
  0x55   :  { %v101_v56 = vld [vmem:[#allocation8 + $0x30] sm:$0xff]  ;;  %151 = vst [vmem:[#allocation10] sm:$0xff] %v143_v46  ;;  %152 = vst [vmem:[#allocation10 + $0x8] sm:$0xff] %v144_v47  ;;  %v633_v61 = vadd.f32 %v82_v24, %v74_v23  ;;  %v164_v63 = vadd.f32 %v625_v51, %v623_v50  ;;  %v102_v2 = vld [vmem:[#allocation8 + $0x38] sm:$0xff]  ;;  %v639_v3 = vsub.f32 %v86_v59, %v78_v58 }
  0x56   :  { %177 = vst [vmem:[#allocation11 + $0x10] sm:$0xff] %v169_v48  ;;  %v170_v62 = vmul.f32 0.5, %v162_v49  ;;  %v637_v0 = vsub.f32 %v101_v56, %v93_v54  ;;  %v171_v5 = vmul.f32 0.5, %v163_v55  ;;  %v641_v6 = vsub.f32 %v102_v2, %v94_v1 }
  0x57   :  { %v137_v9 = vadd.f32 %v631_v60, %v611_v33  ;;  %v114_v10 = vadd.f32 %v98_v28, %v90_v25  ;;  %v172_v12 = vmul.f32 0.5, %v164_v63  ;;  %v107_v17 = vadd.f32 %v83_v31, %v75_v30 }
  0x58   :  { %178 = vst [vmem:[#allocation11 + $0x18] sm:$0xff] %v170_v62  ;;  %v165_v16 = vadd.f32 %v637_v0, %v629_v57  ;;  %v115_v18 = vadd.f32 %v99_v38, %v91_v37  ;;  %179 = vst [vmem:[#allocation11 + $0x20] sm:$0xff] %v171_v5  ;;  %v166_v20 = vadd.f32 %v641_v6, %v639_v3 }
  0x59   :  { %v145_v23 = vmul.f32 0.5, %v137_v9  ;;  %v138_v24 = vadd.f32 %v114_v10, %v633_v61  ;;  %v650_v26 = vadd.f32 %v84_v43, %v76_v40  ;;  %180 = vst [vmem:[#allocation11 + $0x28] sm:$0xff] %v172_v12  ;;  %v116_v28 = vadd.f32 %v100_v45, %v92_v44 }
  0x5a   :  { %v173_v25 = vmul.f32 0.5, %v165_v16  ;;  %v139_v27 = vadd.f32 %v115_v18, %v107_v17  ;;  %v109_v32 = vadd.f32 %v85_v53, %v77_v52  ;;  %v174_v34 = vmul.f32 0.5, %v166_v20 }
  0x5b   :  { %153 = vst [vmem:[#allocation10 + $0x10] sm:$0xff] %v145_v23  ;;  %v146_v30 = vmul.f32 0.5, %v138_v24  ;;  %v117_v31 = vadd.f32 %v101_v56, %v93_v54  ;;  %v110_v35 = vadd.f32 %v86_v59, %v78_v58  ;;  %v140_v38 = vadd.f32 %v116_v28, %v650_v26 }
  0x5c   :  { %181 = vst [vmem:[#allocation11 + $0x30] sm:$0xff] %v173_v25  ;;  %v147_v37 = vmul.f32 0.5, %v139_v27  ;;  %v118_v41 = vadd.f32 %v102_v2, %v94_v1  ;;  %v183_v40 = vsub.f32 %v589_v13, %v583_v7  ;;  %182 = vst [vmem:[#allocation11 + $0x38] sm:$0xff] %v174_v34  ;;  %v184_v44 = vsub.f32 %v595_v19, %v591_v14 }
  0x5d   :  { %154 = vst [vmem:[#allocation10 + $0x18] sm:$0xff] %v146_v30  ;;  %v141_v43 = vadd.f32 %v117_v31, %v109_v32  ;;  %v185_v45 = vsub.f32 %v631_v60, %v611_v33  ;;  %v186_v46 = vsub.f32 %v114_v10, %v633_v61  ;;  %v148_v47 = vmul.f32 0.5, %v140_v38 }
  0x5e   :  { %155 = vst [vmem:[#allocation10 + $0x20] sm:$0xff] %v147_v37  ;;  %v142_v48 = vadd.f32 %v118_v41, %v110_v35  ;;  %v191_v49 = vmul.f32 0.5, %v183_v40  ;;  %v187_v7 = vsub.f32 %v115_v18, %v107_v17 }
  0x5f   :  { %396 = shalt.err (!%p393_p8)
}
  0x60   :  { %s397_s29 = scalar_lea.hbm %s754_s5, 1024 }
  0x61   :  { %p398_p9 = scmp.ne.s32.totalorder %s754_s5, %s397_s29  ;;  %p401_p10 = scmp.lt.u32.totalorder %s397_s29, %s754_s5 }
  0x63   :  { %p403_p11 = pnand %p401_p10, %p398_p9 }
  0x65   :  { %406 = shalt.err (!%p403_p11)
}
  0x66   :  { %250 = dma.vmem_to_hbm [thread:$0]  %s652_s1, 1024, %s754_s5, [#allocation12]   ;;  %v149_v13 = vmul.f32 0.5, %v141_v43  ;;  %v192_v14 = vmul.f32 0.5, %v184_v44  ;;  %v193_v19 = vmul.f32 0.5, %v185_v45  ;;  %v194_v33 = vmul.f32 0.5, %v186_v46 }
  0x67   :  { %s491_s0 = smov [#allocation13]   ;;  %156 = vst [vmem:[#allocation10 + $0x28] sm:$0xff] %v148_v47  ;;  %v150_v52 = vmul.f32 0.5, %v142_v48  ;;  %199 = vst [vmem:[#allocation13] sm:$0xff] %v191_v49  ;;  %v195_v53 = vmul.f32 0.5, %v187_v7  ;;  %v188_v54 = vsub.f32 %v116_v28, %v650_v26  ;;  %v189_v55 = vsub.f32 %v117_v31, %v109_v32  ;;  %s407_s5 = scalar_lea.vmem %s683_s24, 1024 }
  0x68   :  { %s257_s27 = sshll.u32 %s491_s0, 4  ;;  %157 = vst [vmem:[#allocation10 + $0x30] sm:$0xff] %v149_v13  ;;  %200 = vst [vmem:[#allocation13 + $0x8] sm:$0xff] %v192_v14  ;;  %v190_v56 = vsub.f32 %v118_v41, %v110_v35  ;;  %v207_v58 = vsub.f32 %v585_v8, %v581_v4  ;;  %v208_v59 = vsub.f32 %v593_v15, %v587_v11  ;;  %p408_p12 = scmp.ne.s32.totalorder %s683_s24, %s407_s5  ;;  %s695_s27 = int_to_ptr.vmem [resolvable:$true] %s257_s27 }
  0x69   :  { %201 = vst [vmem:[#allocation13 + $0x10] sm:$0xff] %v193_v19  ;;  %202 = vst [vmem:[#allocation13 + $0x18] sm:$0xff] %v194_v33  ;;  %v209_v60 = vsub.f32 %v601_v22, %v599_v21  ;;  %v196_v61 = vmul.f32 0.5, %v188_v54  ;;  %v197_v62 = vmul.f32 0.5, %v189_v55  ;;  %v210_v63 = vsub.f32 %v615_v36, %v607_v29  ;;  %p412_p13 = scmp.lt.s32.totalorder %s683_s24, %s683_s24  ;;  %p413_p0 = scmp.lt.s32.totalorder %s407_s5, %s407_s5 }
  0x6a   :  { %158 = vst [vmem:[#allocation10 + $0x38] sm:$0xff] %v150_v52  ;;  %203 = vst [vmem:[#allocation13 + $0x20] sm:$0xff] %v195_v53  ;;  %v211_v1 = vsub.f32 %v619_v42, %v617_v39  ;;  %v198_v4 = vmul.f32 0.5, %v190_v56  ;;  %v215_v8 = vmul.f32 0.5, %v207_v58  ;;  %v216_v2 = vmul.f32 0.5, %v208_v59 }
  0x6b   :  { %v217_v5 = vmul.f32 0.5, %v209_v60  ;;  %p414_p1 = por %p413_p0, %p412_p13 }
  0x6d   :  { %p415_p2 = pnand %p414_p1, %p408_p12 }
  0x6f   :  { %418 = shalt.err (!%p415_p2)
}
  0x70   :  { %s419_s15 = scalar_lea.hbm %s753_s4, 1024 }
  0x71   :  { %p420_p3 = scmp.ne.s32.totalorder %s753_s4, %s419_s15  ;;  %p423_p4 = scmp.lt.u32.totalorder %s419_s15, %s753_s4 }
  0x73   :  { %p425_p5 = pnand %p423_p4, %p420_p3 }
  0x75   :  { %428 = shalt.err (!%p425_p5)
}
  0x76   :  { %240 = dma.vmem_to_hbm [thread:$0]  %s683_s24, 1024, %s753_s4, [#allocation4]   ;;  %204 = vst [vmem:[#allocation13 + $0x28] sm:$0xff] %v196_v61  ;;  %205 = vst [vmem:[#allocation13 + $0x30] sm:$0xff] %v197_v62  ;;  %v218_v11 = vmul.f32 0.5, %v210_v63  ;;  %v219_v15 = vmul.f32 0.5, %v211_v1  ;;  %v212_v21 = vsub.f32 %v625_v51, %v623_v50  ;;  %v213_v22 = vsub.f32 %v637_v0, %v629_v57 }
  0x77   :  { %s492_s2 = smov [#allocation14]   ;;  %206 = vst [vmem:[#allocation13 + $0x38] sm:$0xff] %v198_v4  ;;  %223 = vst [vmem:[#allocation14] sm:$0xff] %v215_v8  ;;  %v214_v29 = vsub.f32 %v641_v6, %v639_v3  ;;  %s429_s4 = scalar_lea.vmem %s695_s27, 1024 }
  0x78   :  { %s267_s22 = sshll.u32 %s492_s2, 4  ;;  %224 = vst [vmem:[#allocation14 + $0x8] sm:$0xff] %v216_v2  ;;  %225 = vst [vmem:[#allocation14 + $0x10] sm:$0xff] %v217_v5  ;;  %v220_v36 = vmul.f32 0.5, %v212_v21  ;;  %v221_v39 = vmul.f32 0.5, %v213_v22  ;;  %p430_p6 = scmp.ne.s32.totalorder %s695_s27, %s429_s4  ;;  %s268_s22 = int_to_ptr.vmem [resolvable:$true] %s267_s22 }
  0x79   :  { %226 = vst [vmem:[#allocation14 + $0x18] sm:$0xff] %v218_v11  ;;  %227 = vst [vmem:[#allocation14 + $0x20] sm:$0xff] %v219_v15  ;;  %p434_p7 = scmp.lt.s32.totalorder %s695_s27, %s695_s27  ;;  %p435_p8 = scmp.lt.s32.totalorder %s429_s4, %s429_s4 }
  0x7b   :  { %p436_p9 = por %p435_p8, %p434_p7 }
  0x7d   :  { %p437_p10 = pnand %p436_p9, %p430_p6 }
  0x7f   :  { %440 = shalt.err (!%p437_p10)
}
  0x80   :  { %s441_s23 = scalar_lea.hbm %s755_s6, 1024 }
  0x81   :  { %p442_p11 = scmp.ne.s32.totalorder %s755_s6, %s441_s23  ;;  %p445_p12 = scmp.lt.u32.totalorder %s441_s23, %s755_s6 }
  0x83   :  { %p447_p13 = pnand %p445_p12, %p442_p11 }
  0x85   :  { %450 = shalt.err (!%p447_p13)
}
  0x86   :  { %260 = dma.vmem_to_hbm [thread:$0]  %s695_s27, 1024, %s755_s6, [#allocation12]   ;;  %v222_v42 = vmul.f32 0.5, %v214_v29  ;;  %228 = vst [vmem:[#allocation14 + $0x28] sm:$0xff] %v220_v36  ;;  %229 = vst [vmem:[#allocation14 + $0x30] sm:$0xff] %v221_v39 }
  0x87   :  { %s451_s8 = scalar_lea.vmem %s268_s22, 1024  ;;  %p456_p1 = scmp.lt.s32.totalorder %s268_s22, %s268_s22 }
  0x88   :  { %230 = vst [vmem:[#allocation14 + $0x38] sm:$0xff] %v222_v42  ;;  %p452_p0 = scmp.ne.s32.totalorder %s268_s22, %s451_s8  ;;  %p457_p2 = scmp.lt.s32.totalorder %s451_s8, %s451_s8 }
  0x8a   :  { %p458_p3 = por %p457_p2, %p456_p1 }
  0x8c   :  { %p459_p4 = pnand %p458_p3, %p452_p0 }
  0x8e   :  { %462 = shalt.err (!%p459_p4)
}
  0x8f   :  { %s463_s11 = scalar_lea.hbm %s756_s7, 1024 }
  0x90   :  { %p464_p5 = scmp.ne.s32.totalorder %s756_s7, %s463_s11  ;;  %p467_p6 = scmp.lt.u32.totalorder %s463_s11, %s756_s7 }
  0x92   :  { %p469_p7 = pnand %p467_p6, %p464_p5 }
  0x94   :  { %472 = shalt.err (!%p469_p7)
}
  0x95   :  { %270 = dma.vmem_to_hbm [thread:$0]  %s268_s22, 1024, %s756_s7, [#allocation15]  }
  0x96   :  { %479 = dma.done.wait [#allocation4], 1024  }
  0x97   :  { %480 = vsyncadd [#allocation4], 4294966272 }
  0x98   :  { %481 = dma.done.wait [#allocation12], 2048  }
  0x99   :  { %482 = vsyncadd [#allocation12], 4294965248 }
  0x9a   :  { %483 = dma.done.wait [#allocation15], 1024  }
  0x9b   :  { %484 = vsyncadd [#allocation15], 4294966272 }
  0x9c   :  { %283 = vsyncpa [#allocation3], 1 }
  0x9d   :  { %284 = vsyncpa [#allocation6], 1 }
  0x9e   :  { %285 = vsyncpa [#allocation9], 1 }
  0x9f   :  { %286 = vsyncpa [#allocation4], 1 }
  0xa0   :  { %287 = vsyncpa [#allocation12], 1 }
  0xa1   :  { %288 = vsyncpa [#allocation15], 1 }

</bundles_post_ra>
